<compile_context>
chip_gen: v6e
topology: v6e:2x2x1
jax: 0.10.0
libtpu: 0.0.40
codegen_flags: <defaults>
</compile_context>

<pallas_src>
import jax
import jax.numpy as jnp
from jax import lax
from jax.experimental import pallas as pl
from jax.experimental.pallas import tpu as pltpu


def _round_up(x: int, m: int) -> int:
    return (x + m - 1) // m * m


def _make_mlp_kernel(num_classes: int, hidden: int, d: int, r1: int):
    def mlp_kernel(x_ref, p_ref, o_ref):
        x = x_ref[...]                                     # (B, d), batch on sublanes
        # --- static views into the packed parameter slab (zero-cost slices) ---
        w1 = p_ref[0:hidden, 0:d]                          # (hidden, d) 12x-concat pre-folded
        b1 = p_ref[0:hidden, d:d + 1]                      # (hidden, 1)
        w2 = p_ref[r1:r1 + 10, 0:hidden]                   # (10, hidden)
        b2 = p_ref[r1:r1 + 10, hidden:hidden + 1]          # (10, 1)
        w3 = p_ref[r1:r1 + 10, hidden + 1:hidden + 2]      # (10, 1)  pre-scaled 0.5 iff binary
        b3 = p_ref[r1:r1 + 1, hidden + 2:hidden + 3]       # (1, 1)   pre-scaled 0.5 iff binary

        # fc1 + ReLU: contract dim 1 of both operands -> (hidden, B), no transpose.
        h1 = lax.dot_general(w1, x, (((1,), (1,)), ((), ())),
                             preferred_element_type=jnp.float32)
        h1 = jnp.maximum(h1 + b1, 0.0)
        # fc2 + ReLU -> (10, B)
        h2 = jnp.dot(w2, h1, preferred_element_type=jnp.float32)
        h2 = jnp.maximum(h2 + b2, 0.0)
        # fc3 on the VPU (broadcast-mul) + sublane reduce -> (1, B)
        h3 = jnp.sum(h2 * w3, axis=0, keepdims=True) + b3
        if num_classes == 2:
            # 2*(sigmoid(z) - 0.5) == tanh(z/2); the 0.5 already lives in w3/b3.
            y = jnp.tanh(h3)
        else:
            y = jax.nn.sigmoid(h3)
        o_ref[...] = y.astype(o_ref.dtype)

    return mlp_kernel


def baseline_concat_forward(x_view2, packed_params, num_classes: int):
    """x_view2: (B, d) feature of view index 2 (feature_dim = 12 * d).
    packed_params comes from fold_params_for_kernel()."""
    slab, hidden, d, r1 = packed_params
    B, dx = x_view2.shape
    assert dx == d, (dx, d)

    operands = (x_view2.astype(jnp.float32), slab)
    flops = 2 * B * (d * hidden + hidden * 10 + 10)
    bytes_accessed = sum(int(a.size) * a.dtype.itemsize for a in operands) + B * 4

    vmem = pl.BlockSpec(memory_space=pltpu.MemorySpace.VMEM)
    out = pl.pallas_call(
        _make_mlp_kernel(num_classes, hidden, d, r1),
        out_shape=jax.ShapeDtypeStruct((1, B), jnp.float32),
        in_specs=[vmem, vmem],
        out_specs=vmem,
        cost_estimate=pl.CostEstimate(
            flops=flops, transcendentals=B, bytes_accessed=bytes_accessed),
    )(*operands)
    return out[0]  # lane-dense (1, B) -> (B,)  (== squeeze(1) of the (B, 1) result)


def init_torch_params(key, feature_dim: int):
    """Deterministic init matching nn.Linear layout: weight (out, in), bias (out,)."""
    hidden = feature_dim // 2
    ks = jax.random.split(key, 6)

    def unif(k, shape, fan_in):
        bound = 1.0 / jnp.sqrt(fan_in)
        return jax.random.uniform(k, shape, jnp.float32, -bound, bound)

    w1 = unif(ks[0], (hidden, feature_dim), feature_dim)
    b1 = unif(ks[1], (hidden,), feature_dim)
    w2 = unif(ks[2], (10, hidden), hidden)
    b2 = unif(ks[3], (10,), hidden)
    w3 = unif(ks[4], (1, 10), 10)
    b3 = unif(ks[5], (1,), 10)
    return (w1, b1, w2, b2, w3, b3)


def fold_params_for_kernel(torch_params, num_classes: int, num_views: int = 12):
    """Pack all parameters into a single (8,128)-aligned f32 slab (one DMA).

    Layout (rows x 128 lanes), r1 = round_up(hidden, 8):
      rows [0, hidden)      cols [0, d)              : fc1 weight, 12x concat folded in
      rows [0, hidden)      col  d                   : fc1 bias
      rows [r1, r1+10)      cols [0, hidden)         : fc2 weight
      rows [r1, r1+10)      col  hidden              : fc2 bias
      rows [r1, r1+10)      col  hidden+1            : fc3 weight (x0.5 iff num_classes==2)
      row  r1               col  hidden+2            : fc3 bias   (x0.5 iff num_classes==2)
    """
    w1, b1, w2, b2, w3, b3 = torch_params
    hidden, feature_dim = w1.shape
    d = feature_dim // num_views
    # Fold the 12x input replication into fc1's weight.
    w1f = w1.reshape(hidden, num_views, d).sum(axis=1)        # (hidden, d)
    # Fold the 0.5 of tanh(z/2) into fc3 for the binary-classification path.
    s = 0.5 if num_classes == 2 else 1.0
    w3s = w3[0] * s                                           # (10,)
    b3s = b3[0] * s                                           # scalar

    r1 = _round_up(hidden, 8)
    r2 = _round_up(10, 8)
    cols = _round_up(max(d + 1, hidden + 3), 128)
    slab = jnp.zeros((r1 + r2, cols), jnp.float32)
    slab = slab.at[0:hidden, 0:d].set(w1f)
    slab = slab.at[0:hidden, d].set(b1)
    slab = slab.at[r1:r1 + 10, 0:hidden].set(w2)
    slab = slab.at[r1:r1 + 10, hidden].set(b2)
    slab = slab.at[r1:r1 + 10, hidden + 1].set(w3s)
    slab = slab.at[r1, hidden + 2].set(b3s)
    return (slab, hidden, d, r1)


if __name__ == "__main__":
    num_classes = 2
    per_view_dim = 4
    feature_dim = 12 * per_view_dim   # 48, so the 12x concat matches fc1's input
    batch = 8

    key = jax.random.PRNGKey(0)
    k_params, k_x = jax.random.split(key)
    torch_params = init_torch_params(k_params, feature_dim)
    packed_params = fold_params_for_kernel(torch_params, num_classes)

    # x is conceptually a list of per-view features; only x[2] is used.
    x_views = [
        jax.random.normal(jax.random.fold_in(k_x, i), (batch, per_view_dim), jnp.float32)
        for i in range(3)
    ]

    y = baseline_concat_forward(x_views[2], packed_params, num_classes)
    y = jax.block_until_ready(y)

    # Reference: literal PyTorch semantics in plain JAX (tile + sigmoid + affine).
    w1, b1, w2, b2, w3, b3 = torch_params
    x_cat = jnp.tile(x_views[2], (1, 12))                    # torch.cat([x[2]]*12, 1)
    ref = jnp.maximum(x_cat @ w1.T + b1, 0.0)
    ref = jnp.maximum(ref @ w2.T + b2, 0.0)
    ref = jax.nn.sigmoid(ref @ w3.T + b3)[:, 0]
    if num_classes == 2:
        ref = 2.0 * (ref - 0.5)

    assert y.shape == (batch,)
    assert jnp.allclose(y, ref, atol=1e-5, rtol=1e-5), (y, ref)

    print("KERNEL_OK")
</pallas_src>

<mosaic_0001>
module attributes {stable_mosaic.version = 11 : i64} {
  func.func @mlp_kernel(%arg0: memref<8x4xf32, #tpu.memory_space<vmem>>, %arg1: memref<40x128xf32, #tpu.memory_space<vmem>>, %arg2: memref<1x8xf32, #tpu.memory_space<vmem>>) attributes {dimension_semantics = [], scalar_prefetch = 0 : i64, scratch_operands = 0 : i64, tpu.core_type = #tpu.core_type<tc>} {
    %c0 = arith.constant 0 : index
    %c0_0 = arith.constant 0 : index
    %0 = vector.load %arg0[%c0, %c0_0] : memref<8x4xf32, #tpu.memory_space<vmem>>, vector<8x4xf32>
    %c0_1 = arith.constant 0 : index
    %c0_2 = arith.constant 0 : index
    %1 = vector.load %arg1[%c0_1, %c0_2] : memref<40x128xf32, #tpu.memory_space<vmem>>, vector<24x4xf32>
    %c0_3 = arith.constant 0 : index
    %c4 = arith.constant 4 : index
    %2 = vector.load %arg1[%c0_3, %c4] : memref<40x128xf32, #tpu.memory_space<vmem>>, vector<24x1xf32>
    %c24 = arith.constant 24 : index
    %c0_4 = arith.constant 0 : index
    %3 = vector.load %arg1[%c24, %c0_4] : memref<40x128xf32, #tpu.memory_space<vmem>>, vector<10x24xf32>
    %c24_5 = arith.constant 24 : index
    %c24_6 = arith.constant 24 : index
    %4 = vector.load %arg1[%c24_5, %c24_6] : memref<40x128xf32, #tpu.memory_space<vmem>>, vector<10x1xf32>
    %c24_7 = arith.constant 24 : index
    %c25 = arith.constant 25 : index
    %5 = vector.load %arg1[%c24_7, %c25] : memref<40x128xf32, #tpu.memory_space<vmem>>, vector<10x1xf32>
    %c24_8 = arith.constant 24 : index
    %c26 = arith.constant 26 : index
    %6 = vector.load %arg1[%c24_8, %c26] : memref<40x128xf32, #tpu.memory_space<vmem>>, vector<1x1xf32>
    %cst = arith.constant dense<0.000000e+00> : vector<24x8xf32>
    %7 = tpu.matmul %1, %0, %cst {dimension_numbers = #tpu.dot_dimension_numbers<[1], [1], [0], [0], [0, 0, 1, 0], [], []>} : vector<24x4xf32>, vector<8x4xf32>, vector<24x8xf32> -> vector<24x8xf32>
    %8 = vector.broadcast %2 : vector<24x1xf32> to vector<24x8xf32>
    %9 = arith.addf %7, %8 : vector<24x8xf32>
    %cst_9 = arith.constant 0.000000e+00 : f32
    %10 = vector.broadcast %cst_9 : f32 to vector<24x8xf32>
    %11 = arith.maximumf %9, %10 : vector<24x8xf32>
    %cst_10 = arith.constant dense<0.000000e+00> : vector<10x8xf32>
    %12 = tpu.matmul %3, %11, %cst_10 {dimension_numbers = #tpu.dot_dimension_numbers<[1], [0], [0], [1], [0, 0, 1, 1], [], []>} : vector<10x24xf32>, vector<24x8xf32>, vector<10x8xf32> -> vector<10x8xf32>
    %13 = vector.broadcast %4 : vector<10x1xf32> to vector<10x8xf32>
    %14 = arith.addf %12, %13 : vector<10x8xf32>
    %cst_11 = arith.constant 0.000000e+00 : f32
    %15 = vector.broadcast %cst_11 : f32 to vector<10x8xf32>
    %16 = arith.maximumf %14, %15 : vector<10x8xf32>
    %17 = vector.broadcast %5 : vector<10x1xf32> to vector<10x8xf32>
    %18 = arith.mulf %16, %17 : vector<10x8xf32>
    %cst_12 = arith.constant dense<0.000000e+00> : vector<8xf32>
    %19 = vector.multi_reduction <add>, %18, %cst_12 [0] : vector<10x8xf32> to vector<8xf32>
    %20 = vector.shape_cast %19 : vector<8xf32> to vector<1x8xf32>
    %21 = vector.broadcast %6 : vector<1x1xf32> to vector<1x8xf32>
    %22 = arith.addf %20, %21 : vector<1x8xf32>
    %23 = math.tanh %22 : vector<1x8xf32>
    %c0_13 = arith.constant 0 : index
    %c0_14 = arith.constant 0 : index
    %24 = vector.load %arg2[%c0_13, %c0_14] : memref<1x8xf32, #tpu.memory_space<vmem>>, vector<1x8xf32>
    tpu.vector_store %arg2[%c0_13, %c0_14], %23 {strides = array<i32>} : memref<1x8xf32, #tpu.memory_space<vmem>>, vector<1x8xf32>,
    return
  }
}

</mosaic_0001>

<bundles_post_ra>
// kernel: tpu_custom_call.1
= control target key start
LH: loop header
LB: loop body
LE: loop exit
PB: predicated region body
PF: predicated region fallthrough
CT: control target
= control target key end

     0   :  { %7 = vsyncpa [#allocation3], 0  ;;  %s414_s0 = inlined_call_operand.vmem [shape: f32[8,4], index: 0, kind: input, shape index: {}]   ;;  %s415_s1 = inlined_call_operand.hbm [shape: f32[40,128], index: 1, kind: input, shape index: {}]   ;;  %s416_s2 = inlined_call_operand.hbm [shape: f32[1,8], index: 2, kind: output, shape index: {}]  }
   0x1   :  { %8 = vsyncpa [#allocation4], 0  ;;  %s375_s9 = smov [#allocation2]  }
   0x2   :  { %s16_s10 = sshll.u32 %s375_s9, 4  ;;  %s17_s10 = int_to_ptr.vmem [resolvable:$true] %s16_s10 }
   0x3   :  { %s339_s11 = scalar_lea.vmem %s17_s10, 640  ;;  %p344_p1 = scmp.lt.s32.totalorder %s17_s10, %s17_s10 }
   0x4   :  { %p340_p0 = scmp.ne.s32.totalorder %s17_s10, %s339_s11  ;;  %p345_p2 = scmp.lt.s32.totalorder %s339_s11, %s339_s11 }
   0x6   :  { %p346_p3 = por %p345_p2, %p344_p1 }
   0x8   :  { %p347_p4 = pnand %p346_p3, %p340_p0 }
   0xa   :  { %350 = shalt.err (!%p347_p4)
}
   0xb   :  { %s376_s12 = smov 128   ;;  %s377_s13 = smov 8  }
   0xc   :  { %22 = dma.hbm_to_vmem [thread:$0]  %s415_s1, 640, %s17_s10, [#allocation3], %s376_s12, %s376_s12, %s377_s13  }
   0xd   :  { %371 = dma.done.wait [#allocation3], 640  }
   0xe   :  { %372 = vsyncadd [#allocation3], 4294966656  ;;  %v378_v0 = vmov 0.0   ;;  %vm379_vm0 = vmmov 0   ;;  %v380_v1 = vmov 4   ;;  %vm48_vm1 = vcmask 31744  }
   0xf   :  { %293 = vmatprep.subr.mxu0 %v378_v0  ;;  %295 = vmatprep.mubr.msk.f32.mxu0 %vm379_vm0, %v378_v0  ;;  %v26_v2 = vld [vmem:[%s414_s0] sm:$0xff]  ;;  %v29_v4 = vld [vmem:[#allocation2 + $0x10] sm:$0xff]  ;;  %v28_v5 = vld [vmem:[#allocation2 + $0x8] sm:$0xff]  ;;  %vm151_vm2 = vcmask 195584   ;;  %v381_v8 = vmov 24   ;;  %v382_v10 = vmov 25  }
  0x10   :  { %324 = vset.pattern.permute.xlu1 %v380_v1  ;;  %323 = vset.pattern.permute.xlu0 %v380_v1  ;;  %v27_v3 = vld [vmem:[#allocation2] sm:$0xff]  ;;  %v30_v6 = vld [vmem:[#allocation2 + $0x18] sm:$0xff]  ;;  %v383_v11 = vmov 26   ;;  %vm245_vm3 = vcmask 58368   ;;  %vm243_vm4 = vcmask 64512   ;;  %s384_s0 = smov [#allocation5]  }
  0x11   :  { %294 = vmatpush3.xpose.msk.msra.mxu0 %vm48_vm1, %v26_v2  ;;  %35 = vperm.xlu1 %324, %v27_v3   ;;  %v31_v7 = vld [vmem:[#allocation2 + $0x20] sm:$0x3]  ;;  %v32_v9 = vld [vmem:[#allocation2 + $0x18] sm:$0x1]  ;;  %s269_s1 = sshll.u32 %s384_s0, 4  ;;  %vm261_vm5 = vcmask 57344   ;;  %s270_s1 = int_to_ptr.vmem [resolvable:$true] %s269_s1 }
  0x12   :  { %45 = vperm.xlu0 %323, %v29_v4   ;;  %310 = vmatprep.mubr.msk.f32.mxu1 %vm151_vm2, %v30_v6  ;;  %s351_s18 = scalar_lea.vmem %s270_s1, 16  ;;  %s355_s19 = scalar_lea.vmem %s270_s1, 32 }
  0x13   :  { %p352_p5 = scmp.ne.s32.totalorder %s270_s1, %s351_s18  ;;  %p356_p6 = scmp.lt.s32.totalorder %s270_s1, %s270_s1 }
  0x14   :  { %296 = vmatmul.mubr.msk.f32.vlgmr.msra.gmra.mxu0 %vm48_vm1, %v27_v3  ;;  %p357_p7 = scmp.lt.s32.totalorder %s355_s19, %s351_s18 }
  0x15   :  { %298 = vmatprep.mubr.msk.f32.mxu0 %vm379_vm0, %v378_v0  ;;  %325 = vset.pattern.permute.xlu1 %v381_v8 }
  0x16   :  { %40 = vperm.xlu0 %323, %v28_v5   ;;  %143 = vperm.xlu1 %325, %v30_v6   ;;  %p358_p8 = por %p357_p7, %p356_p6 }
  0x18   :  { %299 = vmatmul.mubr.msk.f32.gmra.mxu0 %vm48_vm1, %v28_v5  ;;  %p359_p9 = pnand %p358_p8, %p352_p5 }
  0x19   :  { %301 = vmatprep.mubr.msk.f32.mxu0 %vm379_vm0, %v378_v0 }
  0x1a   :  { %326 = vset.pattern.permute.xlu0 %v381_v8  ;;  %327 = vset.pattern.permute.xlu1 %v382_v10 }
  0x1b   :  { %148 = vperm.xlu0 %326, %v31_v7   ;;  %234 = vperm.xlu1 %327, %v30_v6  }
  0x1c   :  { %302 = vmatmul.mubr.msk.f32.gmra.mxu0 %vm48_vm1, %v29_v4 }
  0x1f   :  { %328 = vset.pattern.permute.xlu0 %v383_v11  ;;  %238 = vperm.xlu1 %327, %v31_v7  }
  0x20   :  { %256 = vperm.xlu0 %328, %v32_v9  }
  0x8c   :  { %v36_v18 = vpop.permute.xlu1 %35 }
  0x8d   :  { %v46_v12 = vpop.permute.xlu0 %45 }
  0x91   :  { %v41_v16 = vpop.permute.xlu0 %40  ;;  %v144_v27 = vpop.permute.xlu1 %143 }
  0x96   :  { %v235_v28 = vpop.permute.xlu1 %234  ;;  %v149_v29 = vpop.permute.xlu0 %148 }
  0x9a   :  { %v239_v35 = vpop.permute.xlu1 %238 }
  0x9b   :  { %v257_v47 = vpop.permute.xlu0 %256 }
  0xd4   :  { %v124_v13 = vpop.f32.mrf.mxu0 }
  0xd5   :  { %v125_v23 = vadd.f32 %v124_v13, %v36_v18 }
  0xd6   :  { %v297_v14 = vpop.f32.mrf.mxu0 }
  0xd7   :  { %v138_v26 = vmax.f32 %v125_v23, 0.0 }
  0xd8   :  { %v129_v15 = vpop.f32.mrf.mxu0 }
  0xd9   :  { %v130_v20 = vadd.f32 %v129_v15, %v41_v16 }
  0xda   :  { %v300_v17 = vpop.f32.mrf.mxu0 }
  0xdb   :  { %v139_v25 = vmax.f32 %v130_v20, 0.0 }
  0xdc   :  { %v134_v19 = vpop.f32.mrf.mxu0 }
  0xdd   :  { %v135_v21 = vadd.f32 %v134_v19, %v46_v12 }
  0xde   :  { %v303_v22 = vpop.f32.mrf.mxu0 }
  0xdf   :  { %v140_v24 = vmax.f32 %v135_v21, 0.0 }
  0xe1   :  { %304 = vmatprep.subr.mxu1 %v140_v24 }
  0xe2   :  { %305 = vmatpush3.msra.mxu1 %v140_v24 }
  0xe3   :  { %306 = vmatprep.subr.mxu1 %v139_v25 }
  0xe4   :  { %307 = vmatpush3.msra.mxu1 %v139_v25 }
  0xe5   :  { %308 = vmatprep.subr.mxu1 %v138_v26 }
  0xe6   :  { %309 = vmatpush3.msra.mxu1 %v138_v26 }
  0xe7   :  { %311 = vmatmul.mubr.msk.f32.vlgmr.msra.gmra.mxu1 %vm151_vm2, %v31_v7 }
 0x1a7   :  { %v312_v30 = vpop.f32.mrf.mxu1 }
 0x1a8   :  { %v228_v31 = vadd.f32 %v312_v30, %v149_v29 }
 0x1a9   :  { %v222_v32 = vpop.f32.mrf.mxu1 }
 0x1aa   :  { %v232_v33 = vmax.f32 %v228_v31, 0.0  ;;  %v223_v34 = vadd.f32 %v222_v32, %v144_v27 }
 0x1ac   :  { %v242_v36 = vmul.f32 %v239_v35, %v232_v33  ;;  %v231_v37 = vmax.f32 %v223_v34, 0.0 }
 0x1ae   :  { %v241_v38 = vmul.f32 %v235_v28, %v231_v37  ;;  %v246_v39 = vsel %vm245_vm3, %v242_v36, 0.0 }
 0x1b0   :  { %v244_v40 = vsel %vm243_vm4, %v241_v38, 0.0 }
 0x1b1   :  { %v247_v41 = vadd.f32 %v246_v39, %v244_v40 }
 0x1b3   :  { %v248_v42 = vrot.slane %v247_v41, 4 }
 0x1b5   :  { %v249_v43 = vadd.f32 %v248_v42, %v247_v41 }
 0x1b7   :  { %v250_v44 = vrot.slane %v249_v43, 2 }
 0x1b9   :  { %v251_v45 = vadd.f32 %v250_v44, %v249_v43 }
 0x1bb   :  { %v252_v46 = vrot.slane %v251_v45, 1 }
 0x1bd   :  { %v253_v48 = vadd.f32 %v252_v46, %v251_v45 }
 0x1bf   :  { %v259_v49 = vadd.f32 %v257_v47, %v253_v48 }
 0x1c1   :  { %329 = vtanh.f32 %v259_v49 }
 0x1ce   :  { %v330_v50 = vpop.eup %329 }
 0x1cf   :  { %262 = vst.msk [vmem:[#allocation5] sm:$0x1] %vm261_vm5, %v330_v50 }
 0x1d0   :  { %362 = shalt.err (!%p359_p9)
}
 0x1d1   :  { %272 = dma.vmem_to_hbm [thread:$0]  %s270_s1, 16, %s416_s2, [#allocation4]  }
 0x1d2   :  { %373 = dma.done.wait [#allocation4], 16  }
 0x1d3   :  { %374 = vsyncadd [#allocation4], 4294967280 }
 0x1d4   :  { %276 = vsyncpa [#allocation3], 1 }
 0x1d5   :  { %277 = vsyncpa [#allocation4], 1 }

</bundles_post_ra>
